<compile_context>
chip_gen: v6e
topology: v6e:2x2x1
jax: 0.10.0
libtpu: 0.0.40
codegen_flags: <defaults>
</compile_context>

<pallas_src>
import functools

import jax
import jax.numpy as jnp
from jax.experimental import pallas as pl
from jax.experimental.pallas import tpu as pltpu


def _round_up(n: int, m: int) -> int:
    return ((n + m - 1) // m) * m


def _sublane_multiple(dtype) -> int:
    # Minimum sublane tile per element width: f32 -> 8, bf16 -> 16, int8/fp8 -> 32.
    return {4: 8, 2: 16, 1: 32}[jnp.dtype(dtype).itemsize]


def _pad2(a, rows: int, cols: int):
    pr, pc = rows - a.shape[0], cols - a.shape[1]
    if pr == 0 and pc == 0:
        return a  # avoid materializing an identical HBM copy
    return jnp.pad(a, ((0, pr), (0, pc)))


def slidenet_kernel(x_ref, w1_ref, b1_ref, w2_ref, b2_ref, o_ref):
    # fc1: (tb, in_p) @ (in_p, hid_p) -> (tb, hid_p); native (M,K)@(K,N) MXU feed,
    # f32 accumulation.
    h = jnp.dot(x_ref[...], w1_ref[...], preferred_element_type=jnp.float32)
    h = h + b1_ref[...]  # (tb, hid_p) + (1, hid_p); bias add stays f32 (VPU)

    # fc2: (tb, hid_p) @ (hid_p, out_p) -> (tb, out_p).
    # Casting the f32 accumulator to the weight dtype is a no-op for f32 weights;
    # for bf16 weights it is deliberate mixed precision (bf16 MXU operands,
    # f32 accumulation) and will not match an f32 reference to 1e-5.
    y = jnp.dot(h.astype(w2_ref.dtype), w2_ref[...],
                preferred_element_type=jnp.float32)
    y = y + b2_ref[...]  # (tb, out_p) + (1, out_p), f32 bias add
    o_ref[...] = y.astype(o_ref.dtype)


def slidenet_forward(x, w1, b1, w2, b2, *, block_b: int = 1024, block_out=None):
    """Mirrors torch: y = (x @ w1.T + b1) @ w2.T + b2.

    x : (B, in_dim)
    w1: (hidden, in_dim),  b1: (hidden,)
    w2: (out_dim, hidden), b2: (out_dim,)
    """
    B, in_dim = x.shape
    hidden = w1.shape[0]
    out_dim = w2.shape[0]

    # ---- Lane-dense feature padding (contraction dims MUST be explicit zeros) --
    in_p = _round_up(in_dim, 128)
    hid_p = _round_up(hidden, 128)
    out_p = _round_up(out_dim, 128)

    # ---- Batch tiling: pad only to the sublane multiple, ragged tiles masked ---
    sub = _sublane_multiple(x.dtype)
    Bp = _round_up(B, sub)
    tb = min(_round_up(block_b, sub), Bp)
    n_b = pl.cdiv(Bp, tb)
    # v7x megacore: ensure the "parallel" batch axis has >= 2 grid steps so the
    # two TensorCores both get work (no-op cost on single-TC v5e/v6e).
    if n_b == 1 and Bp >= 2 * sub:
        tb = _round_up(pl.cdiv(Bp, 2), sub)
        n_b = pl.cdiv(Bp, tb)

    # ---- Optional out-dim tiling (keeps huge fc2 weights off-chip on v7x) ------
    t_out = out_p if block_out is None else min(_round_up(block_out, 128), out_p)
    n_out = pl.cdiv(out_p, t_out)

    # ---- Pad / pre-transpose operands (one-time, amortized over all tiles) -----
    xp = _pad2(x, Bp, in_p)
    w1t = _pad2(w1.T, in_p, hid_p)            # (in_p, hid_p): native (K, N) for fc1
    b1p = _pad2(b1.reshape(1, -1), 1, hid_p)
    w2t = _pad2(w2.T, hid_p, out_p)           # (hid_p, out_p): native (K, N) for fc2
    b2p = _pad2(b2.reshape(1, -1), 1, out_p)

    isz_x = jnp.dtype(x.dtype).itemsize
    isz_w1 = jnp.dtype(w1.dtype).itemsize
    isz_w2 = jnp.dtype(w2.dtype).itemsize
    isz_b1 = jnp.dtype(b1.dtype).itemsize
    isz_b2 = jnp.dtype(b2.dtype).itemsize
    isz_o = isz_x

    # ---- VMEM budget: resident weights + pipelined x/y tiles + f32 scratch -----
    w2_bufs = 1 if n_out == 1 else 2
    resident = (in_p * hid_p * isz_w1 + hid_p * isz_b1
                + w2_bufs * (hid_p * t_out * isz_w2 + t_out * isz_b2))
    io_bufs = 2 * tb * in_p * isz_x + 2 * tb * t_out * isz_o
    f32_scratch = tb * hid_p * 4 + tb * t_out * 4
    need = resident + io_bufs + f32_scratch
    # 1.5x margin; clamp to [32 MiB, 64 MiB] so the request is valid on every
    # generation (v7x physical VMEM is 64 MiB/TC).
    vmem_limit = int(min(max(need * 3 // 2, 32 * 1024 * 1024), 64 * 1024 * 1024))

    flops = 2 * Bp * in_p * hid_p * n_out + 2 * Bp * hid_p * out_p
    bytes_accessed = (Bp * in_p * isz_x + in_p * hid_p * isz_w1 + hid_p * isz_b1
                      + hid_p * out_p * isz_w2 + out_p * isz_b2
                      + Bp * out_p * isz_o)

    const_mode = pl.Buffered(1)                       # fetched once, single buffer
    w2_mode = pl.Buffered(1) if n_out == 1 else None  # default 2-deep if j varies

    y_padded = pl.pallas_call(
        slidenet_kernel,
        out_shape=jax.ShapeDtypeStruct((Bp, out_p), x.dtype),
        grid=(n_b, n_out),
        in_specs=[
            # x tile: double-buffered, pipelined over the batch axis.
            pl.BlockSpec((tb, in_p), lambda i, j: (i, 0)),
            # Weights / biases: VMEM-resident, constant index maps.
            pl.BlockSpec((in_p, hid_p), lambda i, j: (0, 0),
                         pipeline_mode=const_mode),
            pl.BlockSpec((1, hid_p), lambda i, j: (0, 0),
                         pipeline_mode=const_mode),
            pl.BlockSpec((hid_p, t_out), lambda i, j: (0, j),
                         pipeline_mode=w2_mode),
            pl.BlockSpec((1, t_out), lambda i, j: (0, j),
                         pipeline_mode=w2_mode),
        ],
        out_specs=pl.BlockSpec((tb, t_out), lambda i, j: (i, j)),
        compiler_params=pltpu.CompilerParams(
            dimension_semantics=("parallel", "parallel"),
            vmem_limit_bytes=vmem_limit,
        ),
        cost_estimate=pl.CostEstimate(
            flops=flops, transcendentals=0, bytes_accessed=bytes_accessed),
    )(xp, w1t, b1p, w2t, b2p)

    # Strip padding (identity under jit when nothing was padded).
    return y_padded[:B, :out_dim]


if __name__ == "__main__":
    # Small shapes consistent with the module: batch=2, in=16, hidden=32, out=8.
    B, in_dim, hidden, out_dim = 2, 16, 32, 8

    key = jax.random.PRNGKey(0)
    kx, k1, k2, k3, k4 = jax.random.split(key, 5)

    x = jax.random.normal(kx, (B, in_dim), dtype=jnp.float32)
    # Deterministic parameter init (kaiming-uniform-ish scale, like torch Linear).
    w1 = jax.random.uniform(k1, (hidden, in_dim), jnp.float32,
                            minval=-1.0, maxval=1.0) / jnp.sqrt(in_dim)
    b1 = jax.random.uniform(k2, (hidden,), jnp.float32,
                            minval=-1.0, maxval=1.0) / jnp.sqrt(in_dim)
    w2 = jax.random.uniform(k3, (out_dim, hidden), jnp.float32,
                            minval=-1.0, maxval=1.0) / jnp.sqrt(hidden)
    b2 = jax.random.uniform(k4, (out_dim,), jnp.float32,
                            minval=-1.0, maxval=1.0) / jnp.sqrt(hidden)

    fwd = jax.jit(functools.partial(slidenet_forward, block_b=1024))
    y = fwd(x, w1, b1, w2, b2)
    jax.block_until_ready(y)

    # Reference check in plain JAX (same math as the torch nn.Linear chain).
    y_ref = (x @ w1.T + b1) @ w2.T + b2
    assert y.shape == (B, out_dim)
    assert jnp.allclose(y, y_ref, atol=1e-5, rtol=1e-5)

    print("KERNEL_OK")
</pallas_src>

<mosaic_0001>
module attributes {stable_mosaic.version = 11 : i64} {
  func.func @slidenet_kernel(%arg0: i32, %arg1: i32, %arg2: memref<8x128xf32, #tpu.memory_space<vmem>>, %arg3: memref<128x128xf32, #tpu.memory_space<vmem>>, %arg4: memref<1x128xf32, #tpu.memory_space<vmem>>, %arg5: memref<128x128xf32, #tpu.memory_space<vmem>>, %arg6: memref<1x128xf32, #tpu.memory_space<vmem>>, %arg7: memref<8x128xf32, #tpu.memory_space<vmem>>) attributes {dimension_semantics = [#tpu.dimension_semantics<parallel>, #tpu.dimension_semantics<parallel>], iteration_bounds = array<i64: 1, 1>, scalar_prefetch = 0 : i64, scratch_operands = 0 : i64, tpu.core_type = #tpu.core_type<tc>, window_params = [{transform_indices = @transform_0, window_bounds = array<i64: 8, 128>}, {pipeline_mode = #tpu.pipeline_mode<synchronous>, transform_indices = @transform_1, window_bounds = array<i64: 128, 128>}, {pipeline_mode = #tpu.pipeline_mode<synchronous>, transform_indices = @transform_2, window_bounds = array<i64: 1, 128>}, {pipeline_mode = #tpu.pipeline_mode<synchronous>, transform_indices = @transform_3, window_bounds = array<i64: 128, 128>}, {pipeline_mode = #tpu.pipeline_mode<synchronous>, transform_indices = @transform_4, window_bounds = array<i64: 1, 128>}, {transform_indices = @transform_5, window_bounds = array<i64: 8, 128>}]} {
    %c0 = arith.constant 0 : index
    %c0_0 = arith.constant 0 : index
    %0 = vector.load %arg2[%c0, %c0_0] : memref<8x128xf32, #tpu.memory_space<vmem>>, vector<8x128xf32>
    %c0_1 = arith.constant 0 : index
    %c0_2 = arith.constant 0 : index
    %1 = vector.load %arg3[%c0_1, %c0_2] : memref<128x128xf32, #tpu.memory_space<vmem>>, vector<128x128xf32>
    %cst = arith.constant dense<0.000000e+00> : vector<8x128xf32>
    %2 = tpu.matmul %0, %1, %cst {dimension_numbers = #tpu.dot_dimension_numbers<[1], [0], [0], [1], [0, 0, 1, 1], [], []>} : vector<8x128xf32>, vector<128x128xf32>, vector<8x128xf32> -> vector<8x128xf32>
    %c0_3 = arith.constant 0 : index
    %c0_4 = arith.constant 0 : index
    %3 = vector.load %arg4[%c0_3, %c0_4] : memref<1x128xf32, #tpu.memory_space<vmem>>, vector<1x128xf32>
    %4 = vector.broadcast %3 : vector<1x128xf32> to vector<8x128xf32>
    %5 = arith.addf %2, %4 : vector<8x128xf32>
    %c0_5 = arith.constant 0 : index
    %c0_6 = arith.constant 0 : index
    %6 = vector.load %arg5[%c0_5, %c0_6] : memref<128x128xf32, #tpu.memory_space<vmem>>, vector<128x128xf32>
    %cst_7 = arith.constant dense<0.000000e+00> : vector<8x128xf32>
    %7 = tpu.matmul %5, %6, %cst_7 {dimension_numbers = #tpu.dot_dimension_numbers<[1], [0], [0], [1], [0, 0, 1, 1], [], []>} : vector<8x128xf32>, vector<128x128xf32>, vector<8x128xf32> -> vector<8x128xf32>
    %c0_8 = arith.constant 0 : index
    %c0_9 = arith.constant 0 : index
    %8 = vector.load %arg6[%c0_8, %c0_9] : memref<1x128xf32, #tpu.memory_space<vmem>>, vector<1x128xf32>
    %9 = vector.broadcast %8 : vector<1x128xf32> to vector<8x128xf32>
    %10 = arith.addf %7, %9 : vector<8x128xf32>
    %c0_10 = arith.constant 0 : index
    %c0_11 = arith.constant 0 : index
    %11 = vector.load %arg7[%c0_10, %c0_11] : memref<8x128xf32, #tpu.memory_space<vmem>>, vector<8x128xf32>
    tpu.vector_store %arg7[%c0_10, %c0_11], %10 {strides = array<i32>} : memref<8x128xf32, #tpu.memory_space<vmem>>, vector<8x128xf32>,
    return
  }
  func.func @transform_0(%arg0: i32, %arg1: i32) -> (i32, i32) {
    %c0_i32 = arith.constant 0 : i32
    %c0_i32_0 = arith.constant 0 : i32
    return %arg0, %c0_i32 : i32, i32
  }
  func.func @transform_1(%arg0: i32, %arg1: i32) -> (i32, i32) {
    %c0_i32 = arith.constant 0 : i32
    %c0_i32_0 = arith.constant 0 : i32
    %c0_i32_1 = arith.constant 0 : i32
    return %c0_i32, %c0_i32_0 : i32, i32
  }
  func.func @transform_2(%arg0: i32, %arg1: i32) -> (i32, i32) {
    %c0_i32 = arith.constant 0 : i32
    %c0_i32_0 = arith.constant 0 : i32
    %c0_i32_1 = arith.constant 0 : i32
    return %c0_i32, %c0_i32_0 : i32, i32
  }
  func.func @transform_3(%arg0: i32, %arg1: i32) -> (i32, i32) {
    %c0_i32 = arith.constant 0 : i32
    %c0_i32_0 = arith.constant 0 : i32
    return %c0_i32, %arg1 : i32, i32
  }
  func.func @transform_4(%arg0: i32, %arg1: i32) -> (i32, i32) {
    %c0_i32 = arith.constant 0 : i32
    %c0_i32_0 = arith.constant 0 : i32
    return %c0_i32, %arg1 : i32, i32
  }
  func.func @transform_5(%arg0: i32, %arg1: i32) -> (i32, i32) {
    %c0_i32 = arith.constant 0 : i32
    return %arg0, %arg1 : i32, i32
  }
}

</mosaic_0001>

<bundles_post_ra>
// kernel: slidenet_forward.1
= control target key start
LH: loop header
LB: loop body
LE: loop exit
PB: predicated region body
PF: predicated region fallthrough
CT: control target
= control target key end

     0   :  { %v320_v0 = vmov 0.0   ;;  %vm321_vm0 = vmmov 0   ;;  %s494_s1 = inlined_call_operand.vmem [shape: f32[128,128], index: 1, kind: input, shape index: {}]   ;;  %s495_s3 = inlined_call_operand.vmem [shape: f32[128,128], index: 3, kind: input, shape index: {}]   ;;  %s496_s0 = inlined_call_operand.vmem [shape: f32[8,128], index: 0, kind: input, shape index: {}]   ;;  %s497_s2 = inlined_call_operand.vmem [shape: f32[1,128], index: 2, kind: input, shape index: {}]   ;;  %s498_s4 = inlined_call_operand.vmem [shape: f32[1,128], index: 4, kind: input, shape index: {}]   ;;  %s499_s5 = inlined_call_operand.vmem [shape: f32[8,128], index: 5, kind: output, shape index: {}]  }
   0x1   :  { %248 = vmatprep.subr.mxu0 %v320_v0  ;;  %v36_v1 = vld [vmem:[%s494_s1 + $0x78] sm:$0xff]  ;;  %v35_v2 = vld [vmem:[%s494_s1 + $0x70] sm:$0xff]  ;;  %280 = vmatprep.mubr.msk.f32.mxu0 %vm321_vm0, %v320_v0  ;;  %v34_v3 = vld [vmem:[%s494_s1 + $0x68] sm:$0xff] }
   0x2   :  { %249 = vmatpush3.msra.mxu0 %v36_v1  ;;  %283 = vmatprep.subr.mxu1 %v320_v0  ;;  %v33_v4 = vld [vmem:[%s494_s1 + $0x60] sm:$0xff]  ;;  %v129_v5 = vld [vmem:[%s495_s3 + $0x78] sm:$0xff]  ;;  %v128_v7 = vld [vmem:[%s495_s3 + $0x70] sm:$0xff] }
   0x3   :  { %250 = vmatprep.subr.mxu0 %v320_v0  ;;  %315 = vmatprep.mubr.msk.f32.mxu1 %vm321_vm0, %v320_v0  ;;  %v32_v6 = vld [vmem:[%s494_s1 + $0x58] sm:$0xff]  ;;  %v127_v8 = vld [vmem:[%s495_s3 + $0x68] sm:$0xff]  ;;  %v31_v9 = vld [vmem:[%s494_s1 + $0x50] sm:$0xff] }
   0x4   :  { %251 = vmatpush3.msra.mxu0 %v35_v2  ;;  %284 = vmatpush3.msra.mxu1 %v129_v5  ;;  %v126_v10 = vld [vmem:[%s495_s3 + $0x60] sm:$0xff]  ;;  %v30_v11 = vld [vmem:[%s494_s1 + $0x48] sm:$0xff]  ;;  %v125_v12 = vld [vmem:[%s495_s3 + $0x58] sm:$0xff] }
   0x5   :  { %252 = vmatprep.subr.mxu0 %v320_v0  ;;  %285 = vmatprep.subr.mxu1 %v320_v0  ;;  %v29_v13 = vld [vmem:[%s494_s1 + $0x40] sm:$0xff]  ;;  %v124_v14 = vld [vmem:[%s495_s3 + $0x50] sm:$0xff]  ;;  %v28_v15 = vld [vmem:[%s494_s1 + $0x38] sm:$0xff] }
   0x6   :  { %253 = vmatpush3.msra.mxu0 %v34_v3  ;;  %286 = vmatpush3.msra.mxu1 %v128_v7  ;;  %v123_v16 = vld [vmem:[%s495_s3 + $0x48] sm:$0xff]  ;;  %v27_v17 = vld [vmem:[%s494_s1 + $0x30] sm:$0xff]  ;;  %v122_v18 = vld [vmem:[%s495_s3 + $0x40] sm:$0xff] }
   0x7   :  { %254 = vmatprep.subr.mxu0 %v320_v0  ;;  %287 = vmatprep.subr.mxu1 %v320_v0  ;;  %v26_v19 = vld [vmem:[%s494_s1 + $0x28] sm:$0xff]  ;;  %v121_v20 = vld [vmem:[%s495_s3 + $0x38] sm:$0xff]  ;;  %v25_v21 = vld [vmem:[%s494_s1 + $0x20] sm:$0xff] }
   0x8   :  { %255 = vmatpush3.msra.mxu0 %v33_v4  ;;  %288 = vmatpush3.msra.mxu1 %v127_v8  ;;  %v120_v22 = vld [vmem:[%s495_s3 + $0x30] sm:$0xff]  ;;  %v24_v23 = vld [vmem:[%s494_s1 + $0x18] sm:$0xff]  ;;  %v119_v24 = vld [vmem:[%s495_s3 + $0x28] sm:$0xff] }
   0x9   :  { %256 = vmatprep.subr.mxu0 %v320_v0  ;;  %289 = vmatprep.subr.mxu1 %v320_v0  ;;  %v23_v25 = vld [vmem:[%s494_s1 + $0x10] sm:$0xff]  ;;  %v118_v26 = vld [vmem:[%s495_s3 + $0x20] sm:$0xff]  ;;  %v22_v27 = vld [vmem:[%s494_s1 + $0x8] sm:$0xff] }
   0xa   :  { %257 = vmatpush3.msra.mxu0 %v32_v6  ;;  %290 = vmatpush3.msra.mxu1 %v126_v10  ;;  %v117_v28 = vld [vmem:[%s495_s3 + $0x18] sm:$0xff]  ;;  %v21_v29 = vld [vmem:[%s494_s1] sm:$0xff]  ;;  %v116_v31 = vld [vmem:[%s495_s3 + $0x10] sm:$0xff] }
   0xb   :  { %258 = vmatprep.subr.mxu0 %v320_v0  ;;  %291 = vmatprep.subr.mxu1 %v320_v0  ;;  %v20_v30 = vld [vmem:[%s496_s0] sm:$0xff]  ;;  %v115_v32 = vld [vmem:[%s495_s3 + $0x8] sm:$0xff] }
   0xc   :  { %259 = vmatpush3.msra.mxu0 %v31_v9  ;;  %292 = vmatpush3.msra.mxu1 %v125_v12  ;;  %v114_v33 = vld [vmem:[%s495_s3] sm:$0xff] }
   0xd   :  { %260 = vmatprep.subr.mxu0 %v320_v0  ;;  %293 = vmatprep.subr.mxu1 %v320_v0  ;;  %v212_v34 = vld [vmem:[%s497_s2] ss:$0 sm:$0xff] }
   0xe   :  { %261 = vmatpush3.msra.mxu0 %v30_v11  ;;  %294 = vmatpush3.msra.mxu1 %v124_v14  ;;  %v213_v38 = vld [vmem:[%s498_s4] ss:$0 sm:$0xff] }
   0xf   :  { %262 = vmatprep.subr.mxu0 %v320_v0  ;;  %295 = vmatprep.subr.mxu1 %v320_v0 }
  0x10   :  { %263 = vmatpush3.msra.mxu0 %v29_v13  ;;  %296 = vmatpush3.msra.mxu1 %v123_v16 }
  0x11   :  { %264 = vmatprep.subr.mxu0 %v320_v0  ;;  %297 = vmatprep.subr.mxu1 %v320_v0 }
  0x12   :  { %265 = vmatpush3.msra.mxu0 %v28_v15  ;;  %298 = vmatpush3.msra.mxu1 %v122_v18 }
  0x13   :  { %266 = vmatprep.subr.mxu0 %v320_v0  ;;  %299 = vmatprep.subr.mxu1 %v320_v0 }
  0x14   :  { %267 = vmatpush3.msra.mxu0 %v27_v17  ;;  %300 = vmatpush3.msra.mxu1 %v121_v20 }
  0x15   :  { %268 = vmatprep.subr.mxu0 %v320_v0  ;;  %301 = vmatprep.subr.mxu1 %v320_v0 }
  0x16   :  { %269 = vmatpush3.msra.mxu0 %v26_v19  ;;  %302 = vmatpush3.msra.mxu1 %v120_v22 }
  0x17   :  { %270 = vmatprep.subr.mxu0 %v320_v0  ;;  %303 = vmatprep.subr.mxu1 %v320_v0 }
  0x18   :  { %271 = vmatpush3.msra.mxu0 %v25_v21  ;;  %304 = vmatpush3.msra.mxu1 %v119_v24 }
  0x19   :  { %272 = vmatprep.subr.mxu0 %v320_v0  ;;  %305 = vmatprep.subr.mxu1 %v320_v0 }
  0x1a   :  { %273 = vmatpush3.msra.mxu0 %v24_v23  ;;  %306 = vmatpush3.msra.mxu1 %v118_v26 }
  0x1b   :  { %274 = vmatprep.subr.mxu0 %v320_v0  ;;  %307 = vmatprep.subr.mxu1 %v320_v0 }
  0x1c   :  { %275 = vmatpush3.msra.mxu0 %v23_v25  ;;  %308 = vmatpush3.msra.mxu1 %v117_v28 }
  0x1d   :  { %276 = vmatprep.subr.mxu0 %v320_v0  ;;  %309 = vmatprep.subr.mxu1 %v320_v0 }
  0x1e   :  { %277 = vmatpush3.msra.mxu0 %v22_v27  ;;  %310 = vmatpush3.msra.mxu1 %v116_v31 }
  0x1f   :  { %278 = vmatprep.subr.mxu0 %v320_v0  ;;  %311 = vmatprep.subr.mxu1 %v320_v0 }
  0x20   :  { %279 = vmatpush3.msra.mxu0 %v21_v29  ;;  %312 = vmatpush3.msra.mxu1 %v115_v32 }
  0x21   :  { %281 = vmatmul.mubr.f32.vlgmr.msra.gmra.mxu0 %v20_v30  ;;  %313 = vmatprep.subr.mxu1 %v320_v0 }
  0x22   :  { %314 = vmatpush3.msra.mxu1 %v114_v33 }
  0xe1   :  { %v110_v35 = vpop.f32.mrf.mxu0 }
  0xe2   :  { %v111_v36 = vadd.f32 %v212_v34, %v110_v35 }
  0xe3   :  { %v282_v37 = vpop.f32.mrf.mxu0 }
  0xe4   :  { %316 = vmatmul.mubr.f32.vlgmr.msra.gmra.mxu1 %v111_v36 }
 0x1a4   :  { %v203_v39 = vpop.f32.mrf.mxu1 }
 0x1a5   :  { %v204_v40 = vadd.f32 %v213_v38, %v203_v39 }
 0x1a6   :  { %v317_v41 = vpop.f32.mrf.mxu1 }
 0x1a7   :  { %207 = vst [vmem:[%s499_s5] sm:$0xff] %v204_v40 }

</bundles_post_ra>
